<compile_context>
chip_gen: v6e
topology: v6e:2x2x1
jax: 0.10.0
libtpu: 0.0.40
codegen_flags: <defaults>
</compile_context>

<pallas_src>
import functools

import jax
import jax.numpy as jnp
from jax.experimental import pallas as pl
from jax.experimental.pallas import tpu as pltpu


def _round_up(x, m):
    return ((x + m - 1) // m) * m


def _vmem_limit_bytes():
    """~75% of physical per-core VMEM (96 MiB v5e/v6e, 48 MiB v7x)."""
    cap = 64 * 1024 * 1024
    try:
        cap = int(getattr(pltpu.get_tpu_info(), "vmem_capacity_bytes", cap))
    except Exception:
        pass
    return (cap * 3) // 4


def _largest_divisor_tile(n_pad, target):
    """Largest multiple of 128 that divides n_pad and is <= target."""
    best, t = 128, 128
    while t <= min(n_pad, target):
        if n_pad % t == 0:
            best = t
        t += 128
    return best


def _choose_tiles(n):
    """Return (n_pad, tm, tk): n_pad = round_up(n, 128); tm | n_pad, tk | n_pad."""
    n_pad = _round_up(n, 128)
    if n_pad <= 512:
        # >= 2 row tiles when possible so the "parallel" axis can shard across
        # the two TensorCores on v7x (no effect on single-TC v5e / v6e).
        tm = max(128, n_pad // 2)
        return n_pad, tm, n_pad
    # Keep 128-granular padding (no A-traffic inflation) and pick the largest
    # dividing tiles up to tm=512 / tk=1024.
    tm = _largest_divisor_tile(n_pad, 512)
    tk = _largest_divisor_tile(n_pad, 1024)
    return n_pad, tm, tk


# --------------------------------------------------------------------------
# Kernel 1: row-tiled feature transform
#   XW = X @ [Wl | Wr]  ->  XWl (bf16),  XWr + b (f32, exact self term)
# --------------------------------------------------------------------------
def _xw_kernel(x_ref, w_ref, b_ref, xwl_ref, xwr_ref, *, h_pad):
    xw = jnp.dot(x_ref[...], w_ref[...], preferred_element_type=jnp.float32)
    xwl_ref[...] = xw[:, :h_pad].astype(xwl_ref.dtype)
    xwr_ref[...] = xw[:, h_pad:] + b_ref[...]


def _feature_transform(x_pad, w_cat, b_pad, tm, vmem_limit):
    n_pad, f_pad = x_pad.shape
    h2 = w_cat.shape[1]
    h_pad = h2 // 2
    return pl.pallas_call(
        functools.partial(_xw_kernel, h_pad=h_pad),
        out_shape=(
            jax.ShapeDtypeStruct((n_pad, h_pad), jnp.bfloat16),   # X @ Wl
            jax.ShapeDtypeStruct((n_pad, h_pad), jnp.float32),    # X @ Wr + b
        ),
        grid=(n_pad // tm,),
        in_specs=[
            pl.BlockSpec((tm, f_pad), lambda i: (i, 0)),
            pl.BlockSpec((f_pad, h2), lambda i: (0, 0)),
            pl.BlockSpec((1, h_pad), lambda i: (0, 0)),
        ],
        out_specs=[
            pl.BlockSpec((tm, h_pad), lambda i: (i, 0)),
            pl.BlockSpec((tm, h_pad), lambda i: (i, 0)),
        ],
        compiler_params=pltpu.CompilerParams(
            dimension_semantics=("parallel",),
            vmem_limit_bytes=vmem_limit,
        ),
        cost_estimate=pl.CostEstimate(
            flops=2 * n_pad * f_pad * h2,
            transcendentals=0,
            bytes_accessed=(n_pad * f_pad * 2 + f_pad * h2 * 2 + h_pad * 4
                            + n_pad * h_pad * 2 + n_pad * h_pad * 4),
        ),
    )(x_pad, w_cat, b_pad)


# --------------------------------------------------------------------------
# Kernel 2: tiled aggregation
#   out = inv_deg * (A_counts @ XWl) + (X @ Wr + b)     (+ optional ReLU)
# grid = (row tiles, reduction tiles over N); f32 VMEM accumulator.
# --------------------------------------------------------------------------
def _sage_agg_kernel(a_ref, xwl_ref, xwr_ref, inv_deg_ref, o_ref, acc_ref, *,
                     apply_relu, tk, xwl_resident):
    k = pl.program_id(1)

    @pl.when(k == 0)
    def _():
        acc_ref[...] = jnp.zeros_like(acc_ref)

    # int8 edge counts -> bf16 right after the DMA (rides in VPU slack);
    # MXU contraction accumulates in f32.
    a = a_ref[...].astype(jnp.bfloat16)
    if xwl_resident:
        start = pl.multiple_of(k * tk, 128)
        xwl = xwl_ref[pl.ds(start, tk), :]
    else:
        xwl = xwl_ref[...]
    acc_ref[...] += jnp.dot(a, xwl, preferred_element_type=jnp.float32)

    @pl.when(k == pl.num_programs(1) - 1)
    def _():
        # Exact f32 mean normalization + precomputed self term (+ fused ReLU).
        out = acc_ref[...] * inv_deg_ref[...] + xwr_ref[...]
        if apply_relu:
            out = jnp.maximum(out, 0.0)
        o_ref[...] = out.astype(o_ref.dtype)


def _sage_aggregate(adj_i8, xwl, xwr, inv_deg, *, tm, tk, apply_relu,
                    out_dtype, vmem_limit):
    n_pad = adj_i8.shape[0]
    h_pad = xwl.shape[1]

    # Keep XWl fully VMEM-resident when small enough: removes the redundant
    # per-row-tile re-streaming of the (tk, h_pad) blocks entirely.
    xwl_resident = n_pad * h_pad * 2 <= 16 * 1024 * 1024
    if xwl_resident:
        xwl_spec = pl.BlockSpec((n_pad, h_pad), lambda i, k: (0, 0))
        xwl_bytes = n_pad * h_pad * 2
    else:
        xwl_spec = pl.BlockSpec((tk, h_pad), lambda i, k: (k, 0))
        xwl_bytes = (n_pad // tm) * n_pad * h_pad * 2

    out_itemsize = jnp.dtype(out_dtype).itemsize
    bytes_accessed = (n_pad * n_pad                      # A (int8)
                      + xwl_bytes                        # XWl (bf16)
                      + n_pad * h_pad * 4                # XWr + b (f32)
                      + n_pad * 4                        # inv_deg (f32)
                      + n_pad * h_pad * out_itemsize)    # output

    return pl.pallas_call(
        functools.partial(_sage_agg_kernel, apply_relu=apply_relu, tk=tk,
                          xwl_resident=xwl_resident),
        out_shape=jax.ShapeDtypeStruct((n_pad, h_pad), out_dtype),
        grid=(n_pad // tm, n_pad // tk),
        in_specs=[
            pl.BlockSpec((tm, tk), lambda i, k: (i, k)),       # A counts (i8)
            xwl_spec,                                          # X @ Wl (bf16)
            pl.BlockSpec((tm, h_pad), lambda i, k: (i, 0)),    # X @ Wr + b
            pl.BlockSpec((tm, 1), lambda i, k: (i, 0)),        # 1 / deg
        ],
        out_specs=pl.BlockSpec((tm, h_pad), lambda i, k: (i, 0)),
        scratch_shapes=[pltpu.VMEM((tm, h_pad), jnp.float32)],
        compiler_params=pltpu.CompilerParams(
            dimension_semantics=("parallel", "arbitrary"),
            vmem_limit_bytes=vmem_limit,
        ),
        cost_estimate=pl.CostEstimate(
            flops=2 * n_pad * n_pad * h_pad,
            transcendentals=0,
            bytes_accessed=bytes_accessed,
        ),
    )(adj_i8, xwl, xwr, inv_deg)


def sage_conv(adj_i8, inv_deg, x_pad, w_cat, b_pad, *, tm, tk, apply_relu,
              out_dtype, vmem_limit):
    """One SAGEConv layer on padded inputs."""
    xwl, xwr = _feature_transform(x_pad, w_cat, b_pad, tm, vmem_limit)
    return _sage_aggregate(adj_i8, xwl, xwr, inv_deg,
                           tm=tm, tk=tk, apply_relu=apply_relu,
                           out_dtype=out_dtype, vmem_limit=vmem_limit)


# --------------------------------------------------------------------------
# Graph preprocessing + full forward pass
# --------------------------------------------------------------------------
def build_adjacency(edge_index, num_nodes, n_pad):
    """int8 edge-count adjacency A[i, j] = #edges j -> i (zero-padded) plus the
    exact f32 per-row inverse degree used for mean aggregation."""
    del num_nodes  # indices are already < num_nodes <= n_pad
    src = edge_index[0]
    dst = edge_index[1]
    counts = jnp.zeros((n_pad, n_pad), jnp.int32).at[dst, src].add(1)
    # TODO(synk): >127 duplicate edges between one pair would saturate int8.
    counts = jnp.minimum(counts, 127)
    deg = counts.sum(axis=1, keepdims=True).astype(jnp.float32)
    inv_deg = 1.0 / jnp.maximum(deg, 1.0)
    return counts.astype(jnp.int8), inv_deg


def _pad_cat_weights(w_l, w_r, f_pad, h_pad):
    """Pack [Wl | Wr] (stored as (F_in, F_out)) into a (f_pad, 2*h_pad) bf16 slab."""
    f, h = w_l.shape
    w = jnp.zeros((f_pad, 2 * h_pad), jnp.bfloat16)
    w = w.at[:f, :h].set(w_l.astype(jnp.bfloat16))
    w = w.at[:f, h_pad:h_pad + h].set(w_r.astype(jnp.bfloat16))
    return w


def graphsage_forward(x, edge_index, params):
    n, f = x.shape
    h = params["w_l1"].shape[1]
    o = params["w_l2"].shape[1]

    n_pad, tm, tk = _choose_tiles(n)
    f_pad = _round_up(f, 128)
    h_pad = _round_up(h, 128)
    o_pad = _round_up(o, 128)
    vmem_limit = _vmem_limit_bytes()

    adj_i8, inv_deg = build_adjacency(edge_index, n, n_pad)

    x_pad = jnp.zeros((n_pad, f_pad), jnp.bfloat16)
    x_pad = x_pad.at[:n, :f].set(x.astype(jnp.bfloat16))

    wcat1 = _pad_cat_weights(params["w_l1"], params["w_r1"], f_pad, h_pad)
    b1 = jnp.zeros((1, h_pad), jnp.float32).at[0, :h].set(params["b1"])
    wcat2 = _pad_cat_weights(params["w_l2"], params["w_r2"], h_pad, o_pad)
    b2 = jnp.zeros((1, o_pad), jnp.float32).at[0, :o].set(params["b2"])

    # conv1 + ReLU (fused in the aggregation epilogue); hidden kept bf16.
    h1 = sage_conv(adj_i8, inv_deg, x_pad, wcat1, b1, tm=tm, tk=tk,
                   apply_relu=True, out_dtype=jnp.bfloat16,
                   vmem_limit=vmem_limit)
    # F.dropout(p=0.5, training=False) -> identity in eval mode.
    # conv2 (f32 output).
    out_pad = sage_conv(adj_i8, inv_deg, h1, wcat2, b2, tm=tm, tk=tk,
                        apply_relu=False, out_dtype=jnp.float32,
                        vmem_limit=vmem_limit)
    return out_pad[:n, :o]


def init_params(key, in_channels, hidden_channels, out_channels):
    k1, k2, k3, k4 = jax.random.split(key, 4)
    scale1 = 1.0 / jnp.sqrt(in_channels)
    scale2 = 1.0 / jnp.sqrt(hidden_channels)
    return {
        # stored as (F_in, F_out), i.e. already W^T relative to torch Linear
        "w_l1": jax.random.uniform(k1, (in_channels, hidden_channels),
                                   jnp.float32, -scale1, scale1),
        "w_r1": jax.random.uniform(k2, (in_channels, hidden_channels),
                                   jnp.float32, -scale1, scale1),
        "b1": jnp.zeros((hidden_channels,), jnp.float32),
        "w_l2": jax.random.uniform(k3, (hidden_channels, out_channels),
                                   jnp.float32, -scale2, scale2),
        "w_r2": jax.random.uniform(k4, (hidden_channels, out_channels),
                                   jnp.float32, -scale2, scale2),
        "b2": jnp.zeros((out_channels,), jnp.float32),
    }


if __name__ == "__main__":
    # Small synthetic graph consistent with the node-classification setup:
    # in_channels = embedding + mutation_pca + depth + date + is_hypothetical
    num_nodes = 64
    in_channels = 32
    hidden_channels = 32
    out_channels = 8
    num_edges = 256

    key = jax.random.PRNGKey(0)
    kx, ke, kp = jax.random.split(key, 3)

    x = jax.random.normal(kx, (num_nodes, in_channels), jnp.float32)
    edge_index = jax.random.randint(ke, (2, num_edges), 0, num_nodes,
                                    dtype=jnp.int32)
    params = init_params(kp, in_channels, hidden_channels, out_channels)

    out = graphsage_forward(x, edge_index, params)
    out = jax.block_until_ready(out)

    assert out.shape == (num_nodes, out_channels)
    assert bool(jnp.all(jnp.isfinite(out)))
    print("KERNEL_OK")
</pallas_src>

<mosaic_0001>
module attributes {stable_mosaic.version = 11 : i64} {
  func.func @_xw_kernel(%arg0: i32, %arg1: memref<128x128xbf16, #tpu.memory_space<vmem>>, %arg2: memref<128x256xbf16, #tpu.memory_space<vmem>>, %arg3: memref<1x128xf32, #tpu.memory_space<vmem>>, %arg4: memref<128x128xbf16, #tpu.memory_space<vmem>>, %arg5: memref<128x128xf32, #tpu.memory_space<vmem>>) attributes {dimension_semantics = [#tpu.dimension_semantics<parallel>], iteration_bounds = array<i64: 1>, scalar_prefetch = 0 : i64, scratch_operands = 0 : i64, tpu.core_type = #tpu.core_type<tc>, window_params = [{transform_indices = @transform_0, window_bounds = array<i64: 128, 128>}, {pipeline_mode = #tpu.pipeline_mode<synchronous>, transform_indices = @transform_1, window_bounds = array<i64: 128, 256>}, {pipeline_mode = #tpu.pipeline_mode<synchronous>, transform_indices = @transform_2, window_bounds = array<i64: 1, 128>}, {transform_indices = @transform_3, window_bounds = array<i64: 128, 128>}, {transform_indices = @transform_4, window_bounds = array<i64: 128, 128>}]} {
    %c0 = arith.constant 0 : index
    %c0_0 = arith.constant 0 : index
    %0 = vector.load %arg1[%c0, %c0_0] : memref<128x128xbf16, #tpu.memory_space<vmem>>, vector<128x128xbf16>
    %c0_1 = arith.constant 0 : index
    %c0_2 = arith.constant 0 : index
    %1 = vector.load %arg2[%c0_1, %c0_2] : memref<128x256xbf16, #tpu.memory_space<vmem>>, vector<128x256xbf16>
    %cst = arith.constant dense<0.000000e+00> : vector<128x256xf32>
    %2 = tpu.matmul %0, %1, %cst {dimension_numbers = #tpu.dot_dimension_numbers<[1], [0], [0], [1], [0, 0, 1, 1], [], []>} : vector<128x128xbf16>, vector<128x256xbf16>, vector<128x256xf32> -> vector<128x256xf32>
    %3 = vector.extract_strided_slice %2 {offsets = [0, 0], sizes = [128, 128], strides = [1, 1]} : vector<128x256xf32> to vector<128x128xf32>
    %4 = arith.truncf %3 : vector<128x128xf32> to vector<128x128xbf16>
    %c0_3 = arith.constant 0 : index
    %c0_4 = arith.constant 0 : index
    %5 = vector.load %arg4[%c0_3, %c0_4] : memref<128x128xbf16, #tpu.memory_space<vmem>>, vector<128x128xbf16>
    tpu.vector_store %arg4[%c0_3, %c0_4], %4 {strides = array<i32>} : memref<128x128xbf16, #tpu.memory_space<vmem>>, vector<128x128xbf16>,
    %6 = vector.extract_strided_slice %2 {offsets = [0, 128], sizes = [128, 128], strides = [1, 1]} : vector<128x256xf32> to vector<128x128xf32>
    %c0_5 = arith.constant 0 : index
    %c0_6 = arith.constant 0 : index
    %7 = vector.load %arg3[%c0_5, %c0_6] : memref<1x128xf32, #tpu.memory_space<vmem>>, vector<1x128xf32>
    %8 = vector.broadcast %7 : vector<1x128xf32> to vector<128x128xf32>
    %9 = arith.addf %6, %8 : vector<128x128xf32>
    %c0_7 = arith.constant 0 : index
    %c0_8 = arith.constant 0 : index
    %10 = vector.load %arg5[%c0_7, %c0_8] : memref<128x128xf32, #tpu.memory_space<vmem>>, vector<128x128xf32>
    tpu.vector_store %arg5[%c0_7, %c0_8], %9 {strides = array<i32>} : memref<128x128xf32, #tpu.memory_space<vmem>>, vector<128x128xf32>,
    return
  }
  func.func @transform_0(%arg0: i32) -> (i32, i32) {
    %c0_i32 = arith.constant 0 : i32
    %c0_i32_0 = arith.constant 0 : i32
    return %arg0, %c0_i32 : i32, i32
  }
  func.func @transform_1(%arg0: i32) -> (i32, i32) {
    %c0_i32 = arith.constant 0 : i32
    %c0_i32_0 = arith.constant 0 : i32
    %c0_i32_1 = arith.constant 0 : i32
    return %c0_i32, %c0_i32_0 : i32, i32
  }
  func.func @transform_2(%arg0: i32) -> (i32, i32) {
    %c0_i32 = arith.constant 0 : i32
    %c0_i32_0 = arith.constant 0 : i32
    %c0_i32_1 = arith.constant 0 : i32
    return %c0_i32, %c0_i32_0 : i32, i32
  }
  func.func @transform_3(%arg0: i32) -> (i32, i32) {
    %c0_i32 = arith.constant 0 : i32
    %c0_i32_0 = arith.constant 0 : i32
    return %arg0, %c0_i32 : i32, i32
  }
  func.func @transform_4(%arg0: i32) -> (i32, i32) {
    %c0_i32 = arith.constant 0 : i32
    %c0_i32_0 = arith.constant 0 : i32
    return %arg0, %c0_i32 : i32, i32
  }
}

</mosaic_0001>

<bundles_post_ra>
// kernel: tpu_custom_call.1
= control target key start
LH: loop header
LB: loop body
LE: loop exit
PB: predicated region body
PF: predicated region fallthrough
CT: control target
= control target key end

     0   :  { %10 = vsyncpa [#allocation3], 0  ;;  %s809_s0 = inlined_call_operand.hbm [shape: bf16[128,128], index: 0, kind: input, shape index: {}]   ;;  %s810_s1 = inlined_call_operand.hbm [shape: bf16[128,256], index: 1, kind: input, shape index: {}]   ;;  %s811_s2 = inlined_call_operand.vmem [shape: f32[1,128], index: 2, kind: input, shape index: {}]   ;;  %s812_s3 = inlined_call_operand.hbm [shape: bf16[128,128], index: 3, kind: output, shape index: {0}]   ;;  %s813_s4 = inlined_call_operand.hbm [shape: f32[128,128], index: 4, kind: output, shape index: {1}]  }
   0x1   :  { %11 = vsyncpa [#allocation6], 0 }
   0x2   :  { %12 = vsyncpa [#allocation4], 0 }
   0x3   :  { %13 = vsyncpa [#allocation9], 0  ;;  %s722_s15 = smov [#allocation2]  }
   0x4   :  { %s19_s16 = sshll.u32 %s722_s15, 4  ;;  %s20_s16 = int_to_ptr.vmem [resolvable:$true] %s19_s16 }
   0x5   :  { %s642_s17 = scalar_lea.vmem %s20_s16, 1024  ;;  %p647_p1 = scmp.lt.s32.totalorder %s20_s16, %s20_s16 }
   0x6   :  { %p643_p0 = scmp.ne.s32.totalorder %s20_s16, %s642_s17  ;;  %p648_p2 = scmp.lt.s32.totalorder %s642_s17, %s642_s17 }
   0x8   :  { %p649_p3 = por %p648_p2, %p647_p1 }
   0xa   :  { %p650_p4 = pnand %p649_p3, %p643_p0 }
   0xc   :  { %653 = shalt.err (!%p650_p4)
}
   0xd   :  { %s723_s18 = smov 64   ;;  %s724_s19 = smov 4  }
   0xe   :  { %25 = dma.hbm_to_vmem [thread:$0]  %s809_s0, 1024, %s20_s16, [#allocation3], %s723_s18, %s723_s18, %s724_s19  }
   0xf   :  { %s725_s22 = smov [#allocation5]  }
  0x10   :  { %s31_s23 = sshll.u32 %s725_s22, 4  ;;  %s32_s23 = int_to_ptr.vmem [resolvable:$true] %s31_s23 }
  0x11   :  { %s662_s24 = scalar_lea.vmem %s32_s23, 2048  ;;  %p667_p6 = scmp.lt.s32.totalorder %s32_s23, %s32_s23 }
  0x12   :  { %p663_p5 = scmp.ne.s32.totalorder %s32_s23, %s662_s24  ;;  %p668_p7 = scmp.lt.s32.totalorder %s662_s24, %s662_s24 }
  0x14   :  { %p669_p8 = por %p668_p7, %p667_p6 }
  0x16   :  { %p670_p9 = pnand %p669_p8, %p663_p5 }
  0x18   :  { %673 = shalt.err (!%p670_p9)
}
  0x19   :  { %s726_s25 = smov 128   ;;  %s727_s26 = smov 8  }
  0x1a   :  { %37 = dma.hbm_to_vmem [thread:$0]  %s810_s1, 2048, %s32_s23, [#allocation6], %s726_s25, %s726_s25, %s727_s26  }
  0x1b   :  { %714 = dma.done.wait [#allocation3], 1024  }
  0x1c   :  { %715 = vsyncadd [#allocation3], 4294966272 }
  0x1d   :  { %716 = dma.done.wait [#allocation6], 2048  }
  0x1e   :  { %717 = vsyncadd [#allocation6], 4294965248  ;;  %v728_v0 = vmov 0   ;;  %v602_v1 = vld [vmem:[#allocation5 + $0x74] ss:$8 sps:$4 sm:$0xff]   ;;  %v626_v17 = vld [vmem:[#allocation2] sm:$0xff]  }
  0x1f   :  { %239 = vmatprep.mubr.bf16.mxu0 %v728_v0  ;;  %279 = vmatprep.mubr.bf16.mxu1 %v728_v0  ;;  %v604_v2 = vld [vmem:[#allocation5 + $0x70] ss:$8 sps:$4 sm:$0xff]   ;;  %v605_v3 = vld [vmem:[#allocation5 + $0x64] ss:$8 sps:$4 sm:$0xff]   ;;  %v607_v4 = vld [vmem:[#allocation5 + $0x60] ss:$8 sps:$4 sm:$0xff]  }
  0x20   :  { %207 = vmatprep.subr.bf16.mxu0 %v602_v1  ;;  %577 = vmatprep.subr.bf16.mxu1 %v602_v1  ;;  %v608_v5 = vld [vmem:[#allocation5 + $0x54] ss:$8 sps:$4 sm:$0xff]   ;;  %v610_v6 = vld [vmem:[#allocation5 + $0x50] ss:$8 sps:$4 sm:$0xff]   ;;  %v611_v7 = vld [vmem:[#allocation5 + $0x44] ss:$8 sps:$4 sm:$0xff]  }
  0x21   :  { %208 = vmatpush1.bf16.msra.mxu0 %v604_v2  ;;  %585 = vmatpush1.bf16.msra.mxu1 %v604_v2  ;;  %v613_v8 = vld [vmem:[#allocation5 + $0x40] ss:$8 sps:$4 sm:$0xff]   ;;  %v614_v9 = vld [vmem:[#allocation5 + $0x34] ss:$8 sps:$4 sm:$0xff]   ;;  %v616_v10 = vld [vmem:[#allocation5 + $0x30] ss:$8 sps:$4 sm:$0xff]  }
  0x22   :  { %209 = vmatprep.subr.bf16.mxu0 %v605_v3  ;;  %578 = vmatprep.subr.bf16.mxu1 %v605_v3  ;;  %v617_v11 = vld [vmem:[#allocation5 + $0x24] ss:$8 sps:$4 sm:$0xff]   ;;  %v619_v12 = vld [vmem:[#allocation5 + $0x20] ss:$8 sps:$4 sm:$0xff]   ;;  %v620_v13 = vld [vmem:[#allocation5 + $0x14] ss:$8 sps:$4 sm:$0xff]  }
  0x23   :  { %v622_v14 = vld [vmem:[#allocation5 + $0x10] ss:$8 sps:$4 sm:$0xff]   ;;  %v623_v15 = vld [vmem:[#allocation5 + $0x4] ss:$8 sps:$4 sm:$0xff]   ;;  %v625_v16 = vld [vmem:[#allocation5] ss:$8 sps:$4 sm:$0xff]  }
  0x24   :  { %v627_v18 = vld [vmem:[#allocation2 + $0x20] sm:$0xff]   ;;  %v628_v19 = vld [vmem:[#allocation2 + $0x8] sm:$0xff]   ;;  %v630_v21 = vld [vmem:[#allocation2 + $0x10] sm:$0xff]   ;;  %s730_s30 = smov [#allocation8]  }
  0x25   :  { %210 = vmatpush1.bf16.msra.mxu0 %v607_v4  ;;  %586 = vmatpush1.bf16.msra.mxu1 %v607_v4  ;;  %v629_v20 = vld [vmem:[#allocation2 + $0x28] sm:$0xff]   ;;  %v631_v22 = vld [vmem:[#allocation2 + $0x30] sm:$0xff]   ;;  %v632_v23 = vld [vmem:[#allocation2 + $0x18] sm:$0xff]   ;;  %s456_s5 = sshll.u32 %s730_s30, 4  ;;  %s457_s5 = int_to_ptr.vmem [resolvable:$true] %s456_s5 }
  0x26   :  { %211 = vmatprep.subr.bf16.mxu0 %v608_v5  ;;  %579 = vmatprep.subr.bf16.mxu1 %v608_v5  ;;  %v633_v24 = vld [vmem:[#allocation2 + $0x38] sm:$0xff]   ;;  %v779_v27 = vld [vmem:[%s811_s2] ss:$0 sm:$0xff]  ;;  %s729_s2 = smov [#allocation7]  }
  0x27   :  { %s444_s29 = sshll.u32 %s729_s2, 4  ;;  %s445_s29 = int_to_ptr.vmem [resolvable:$true] %s444_s29 }
  0x28   :  { %s674_s6 = scalar_lea.vmem %s445_s29, 1024  ;;  %p679_p11 = scmp.lt.s32.totalorder %s445_s29, %s445_s29 }
  0x29   :  { %212 = vmatpush1.bf16.msra.mxu0 %v610_v6  ;;  %587 = vmatpush1.bf16.msra.mxu1 %v610_v6  ;;  %p675_p10 = scmp.ne.s32.totalorder %s445_s29, %s674_s6  ;;  %p680_p12 = scmp.lt.s32.totalorder %s674_s6, %s674_s6 }
  0x2a   :  { %213 = vmatprep.subr.bf16.mxu0 %v611_v7  ;;  %580 = vmatprep.subr.bf16.mxu1 %v611_v7 }
  0x2b   :  { %p681_p13 = por %p680_p12, %p679_p11 }
  0x2d   :  { %214 = vmatpush1.bf16.msra.mxu0 %v613_v8  ;;  %588 = vmatpush1.bf16.msra.mxu1 %v613_v8  ;;  %p682_p0 = pnand %p681_p13, %p675_p10 }
  0x2e   :  { %215 = vmatprep.subr.bf16.mxu0 %v614_v9  ;;  %581 = vmatprep.subr.bf16.mxu1 %v614_v9 }
  0x31   :  { %216 = vmatpush1.bf16.msra.mxu0 %v616_v10  ;;  %589 = vmatpush1.bf16.msra.mxu1 %v616_v10 }
  0x32   :  { %217 = vmatprep.subr.bf16.mxu0 %v617_v11  ;;  %582 = vmatprep.subr.bf16.mxu1 %v617_v11 }
  0x35   :  { %218 = vmatpush1.bf16.msra.mxu0 %v619_v12  ;;  %590 = vmatpush1.bf16.msra.mxu1 %v619_v12 }
  0x36   :  { %219 = vmatprep.subr.bf16.mxu0 %v620_v13  ;;  %583 = vmatprep.subr.bf16.mxu1 %v620_v13 }
  0x39   :  { %220 = vmatpush1.bf16.msra.mxu0 %v622_v14  ;;  %591 = vmatpush1.bf16.msra.mxu1 %v622_v14 }
  0x3a   :  { %221 = vmatprep.subr.bf16.mxu0 %v623_v15  ;;  %584 = vmatprep.subr.bf16.mxu1 %v623_v15 }
  0x3d   :  { %222 = vmatpush1.bf16.msra.mxu0 %v625_v16  ;;  %592 = vmatpush1.bf16.msra.mxu1 %v625_v16 }
  0x40   :  { %240 = vmatmul.mubr.bf16.vlgmr.msra.gmra.mxu0 %v626_v17  ;;  %280 = vmatmul.mubr.bf16.vlgmr.msra.gmra.mxu1 %v627_v18 }
  0x41   :  { %249 = vmatprep.mubr.bf16.mxu0 %v728_v0  ;;  %289 = vmatprep.mubr.bf16.mxu1 %v728_v0 }
  0x48   :  { %250 = vmatmul.mubr.bf16.gmra.mxu0 %v628_v19  ;;  %290 = vmatmul.mubr.bf16.gmra.mxu1 %v629_v20 }
  0x49   :  { %259 = vmatprep.mubr.bf16.mxu0 %v728_v0  ;;  %299 = vmatprep.mubr.bf16.mxu1 %v728_v0 }
  0x50   :  { %260 = vmatmul.mubr.bf16.gmra.mxu0 %v630_v21  ;;  %300 = vmatmul.mubr.bf16.gmra.mxu1 %v631_v22 }
  0x51   :  { %269 = vmatprep.mubr.bf16.mxu0 %v728_v0  ;;  %309 = vmatprep.mubr.bf16.mxu1 %v728_v0 }
  0x58   :  { %270 = vmatmul.mubr.bf16.gmra.mxu0 %v632_v23  ;;  %310 = vmatmul.mubr.bf16.gmra.mxu1 %v633_v24 }
 0x100   :  { %v241_v25 = vpop.f32.mrf.mxu0  ;;  %v281_v26 = vpop.f32.mrf.mxu1 }
 0x102   :  { %v243_v28 = vpop.f32.mrf.mxu0  ;;  %v283_v29 = vpop.f32.mrf.mxu1 }
 0x103   :  { %v407_v30 = vadd.f32 %v779_v27, %v243_v28  ;;  %v415_v31 = vadd.f32 %v779_v27, %v283_v29 }
 0x104   :  { %v245_v32 = vpop.f32.mrf.mxu0  ;;  %v285_v33 = vpop.f32.mrf.mxu1 }
 0x105   :  { %423 = vst [vmem:[#allocation8] sm:$0xff] %v407_v30  ;;  %431 = vst [vmem:[#allocation8 + $0x40] sm:$0xff] %v415_v31  ;;  %v533_v34 = vpack.c.bf16 %v245_v32, %v241_v25  ;;  %v553_v35 = vpack.c.bf16 %v285_v33, %v281_v26 }
 0x106   :  { %v247_v36 = vpop.f32.mrf.mxu0  ;;  %v287_v37 = vpop.f32.mrf.mxu1 }
 0x107   :  { %534 = vst [vmem:[#allocation7] sm:$0xff] %v533_v34   ;;  %573 = vst [vmem:[#allocation7 + $0x20] sm:$0xff] %v553_v35   ;;  %v408_v38 = vadd.f32 %v779_v27, %v247_v36  ;;  %v416_v39 = vadd.f32 %v779_v27, %v287_v37 }
 0x108   :  { %v251_v40 = vpop.f32.mrf.mxu0  ;;  %v291_v41 = vpop.f32.mrf.mxu1 }
 0x109   :  { %424 = vst [vmem:[#allocation8 + $0x8] sm:$0xff] %v408_v38  ;;  %432 = vst [vmem:[#allocation8 + $0x48] sm:$0xff] %v416_v39 }
 0x10a   :  { %v253_v42 = vpop.f32.mrf.mxu0  ;;  %v293_v43 = vpop.f32.mrf.mxu1 }
 0x10b   :  { %v409_v44 = vadd.f32 %v779_v27, %v253_v42  ;;  %v417_v45 = vadd.f32 %v779_v27, %v293_v43 }
 0x10c   :  { %v255_v46 = vpop.f32.mrf.mxu0  ;;  %v295_v47 = vpop.f32.mrf.mxu1 }
 0x10d   :  { %425 = vst [vmem:[#allocation8 + $0x10] sm:$0xff] %v409_v44  ;;  %433 = vst [vmem:[#allocation8 + $0x50] sm:$0xff] %v417_v45  ;;  %v538_v48 = vpack.c.bf16 %v255_v46, %v251_v40  ;;  %v558_v49 = vpack.c.bf16 %v295_v47, %v291_v41 }
 0x10e   :  { %v257_v50 = vpop.f32.mrf.mxu0  ;;  %v297_v51 = vpop.f32.mrf.mxu1 }
 0x10f   :  { %570 = vst [vmem:[#allocation7 + $0x8] sm:$0xff] %v538_v48   ;;  %574 = vst [vmem:[#allocation7 + $0x28] sm:$0xff] %v558_v49   ;;  %v410_v52 = vadd.f32 %v779_v27, %v257_v50  ;;  %v418_v53 = vadd.f32 %v779_v27, %v297_v51 }
 0x110   :  { %v261_v54 = vpop.f32.mrf.mxu0  ;;  %v301_v55 = vpop.f32.mrf.mxu1 }
 0x111   :  { %426 = vst [vmem:[#allocation8 + $0x18] sm:$0xff] %v410_v52  ;;  %434 = vst [vmem:[#allocation8 + $0x58] sm:$0xff] %v418_v53 }
 0x112   :  { %v263_v56 = vpop.f32.mrf.mxu0  ;;  %v303_v57 = vpop.f32.mrf.mxu1 }
 0x113   :  { %v411_v58 = vadd.f32 %v779_v27, %v263_v56  ;;  %v419_v59 = vadd.f32 %v779_v27, %v303_v57 }
 0x114   :  { %v265_v60 = vpop.f32.mrf.mxu0  ;;  %v305_v61 = vpop.f32.mrf.mxu1 }
 0x115   :  { %427 = vst [vmem:[#allocation8 + $0x20] sm:$0xff] %v411_v58  ;;  %435 = vst [vmem:[#allocation8 + $0x60] sm:$0xff] %v419_v59  ;;  %v543_v62 = vpack.c.bf16 %v265_v60, %v261_v54  ;;  %v563_v63 = vpack.c.bf16 %v305_v61, %v301_v55 }
 0x116   :  { %v267_v0 = vpop.f32.mrf.mxu0  ;;  %v307_v1 = vpop.f32.mrf.mxu1 }
 0x117   :  { %571 = vst [vmem:[#allocation7 + $0x10] sm:$0xff] %v543_v62   ;;  %575 = vst [vmem:[#allocation7 + $0x30] sm:$0xff] %v563_v63   ;;  %v412_v2 = vadd.f32 %v779_v27, %v267_v0  ;;  %v420_v3 = vadd.f32 %v779_v27, %v307_v1 }
 0x118   :  { %v271_v4 = vpop.f32.mrf.mxu0  ;;  %v311_v5 = vpop.f32.mrf.mxu1 }
 0x119   :  { %428 = vst [vmem:[#allocation8 + $0x28] sm:$0xff] %v412_v2  ;;  %436 = vst [vmem:[#allocation8 + $0x68] sm:$0xff] %v420_v3 }
 0x11a   :  { %v273_v6 = vpop.f32.mrf.mxu0  ;;  %v313_v7 = vpop.f32.mrf.mxu1 }
 0x11b   :  { %v413_v8 = vadd.f32 %v779_v27, %v273_v6  ;;  %v421_v9 = vadd.f32 %v779_v27, %v313_v7 }
 0x11c   :  { %v275_v10 = vpop.f32.mrf.mxu0  ;;  %v315_v11 = vpop.f32.mrf.mxu1 }
 0x11d   :  { %429 = vst [vmem:[#allocation8 + $0x30] sm:$0xff] %v413_v8  ;;  %437 = vst [vmem:[#allocation8 + $0x70] sm:$0xff] %v421_v9  ;;  %v548_v12 = vpack.c.bf16 %v275_v10, %v271_v4  ;;  %v568_v13 = vpack.c.bf16 %v315_v11, %v311_v5 }
 0x11e   :  { %v277_v14 = vpop.f32.mrf.mxu0  ;;  %v317_v15 = vpop.f32.mrf.mxu1 }
 0x11f   :  { %572 = vst [vmem:[#allocation7 + $0x18] sm:$0xff] %v548_v12   ;;  %576 = vst [vmem:[#allocation7 + $0x38] sm:$0xff] %v568_v13   ;;  %v414_v16 = vadd.f32 %v779_v27, %v277_v14  ;;  %v422_v17 = vadd.f32 %v779_v27, %v317_v15 }
 0x120   :  { %685 = shalt.err (!%p682_p0)
}
 0x121   :  { %450 = dma.vmem_to_hbm [thread:$0]  %s445_s29, 1024, %s812_s3, [#allocation4], %s723_s18, %s723_s18, %s724_s19   ;;  %430 = vst [vmem:[#allocation8 + $0x38] sm:$0xff] %v414_v16  ;;  %438 = vst [vmem:[#allocation8 + $0x78] sm:$0xff] %v422_v17 }
 0x122   :  { %s694_s9 = scalar_lea.vmem %s457_s5, 2048  ;;  %p699_p2 = scmp.lt.s32.totalorder %s457_s5, %s457_s5 }
 0x123   :  { %p695_p1 = scmp.ne.s32.totalorder %s457_s5, %s694_s9  ;;  %p700_p3 = scmp.lt.s32.totalorder %s694_s9, %s694_s9 }
 0x125   :  { %p701_p4 = por %p700_p3, %p699_p2 }
 0x127   :  { %p702_p5 = pnand %p701_p4, %p695_p1 }
 0x129   :  { %705 = shalt.err (!%p702_p5)
}
 0x12a   :  { %462 = dma.vmem_to_hbm [thread:$0]  %s457_s5, 2048, %s813_s4, [#allocation9], %s726_s25, %s726_s25, %s727_s26  }
 0x12b   :  { %718 = dma.done.wait [#allocation4], 1024  }
 0x12c   :  { %719 = vsyncadd [#allocation4], 4294966272 }
 0x12d   :  { %720 = dma.done.wait [#allocation9], 2048  }
 0x12e   :  { %721 = vsyncadd [#allocation9], 4294965248 }
 0x12f   :  { %469 = vsyncpa [#allocation3], 1 }
 0x130   :  { %470 = vsyncpa [#allocation6], 1 }
 0x131   :  { %471 = vsyncpa [#allocation4], 1 }
 0x132   :  { %472 = vsyncpa [#allocation9], 1 }

</bundles_post_ra>
